<compile_context>
chip_gen: v7x
topology: tpu7x:2x2x1
jax: 0.10.0
libtpu: 0.0.40
codegen_flags: <defaults>
</compile_context>

<pallas_src>
import functools

import jax
import jax.numpy as jnp
from jax.experimental import pallas as pl
from jax.experimental.pallas import tpu as pltpu


# --------------------------------------------------------------------------- #
# Kernel
# --------------------------------------------------------------------------- #
def _mean_pool_kernel(x_ref, o_ref, acc_ref, *, n_total, tn, rem):
    """x_ref: (tb, tn, tD); o_ref: (tb, 1, tD); acc_ref: (tb, tD) f32 scratch."""
    k = pl.program_id(2)                 # reduction axis (num_patches), last
    nk = pl.num_programs(2)

    @pl.when(k == 0)
    def _init():
        acc_ref[...] = jnp.zeros_like(acc_ref)

    x = x_ref[...].astype(jnp.float32)

    if rem == tn:
        # N divisible by tn: every tile is fully valid.
        acc_ref[...] += jnp.sum(x, axis=1)
    else:
        # Last tile is partial: rows >= rem hold garbage (OOB block read) and
        # must be masked out of the sum.
        @pl.when(k < nk - 1)
        def _full():
            acc_ref[...] += jnp.sum(x, axis=1)

        @pl.when(k == nk - 1)
        def _partial():
            row = jax.lax.broadcasted_iota(jnp.int32, x.shape, 1)
            acc_ref[...] += jnp.sum(jnp.where(row < rem, x, 0.0), axis=1)

    @pl.when(k == nk - 1)
    def _finalize():
        # Exact divide by the true N (runs once) to match torch .mean(dim=1).
        mean = (acc_ref[...] / jnp.float32(n_total)).astype(o_ref.dtype)
        o_ref[...] = mean[:, None, :]


# --------------------------------------------------------------------------- #
# Tile selection helpers
# --------------------------------------------------------------------------- #
def _largest_divisor(total, multiple, cap):
    """Largest divisor of `total` that is a multiple of `multiple` and <= cap."""
    best = None
    d = 1
    while d * d <= total:
        if total % d == 0:
            for cand in (d, total // d):
                if cand % multiple == 0 and cand <= cap:
                    if best is None or cand > best:
                        best = cand
        d += 1
    return best


def _tensorcores_per_chip():
    """Best-effort TC-per-chip count; conservative default of 1 (no splits)."""
    try:
        kind = jax.devices()[0].device_kind.lower()
    except Exception:
        return 1
    return 2 if any(v in kind for v in ("v7", "v5p", "v4")) else 1


def _input_spec(tb, tn, tD, buffers):
    """Input BlockSpec with optional N-deep buffering (fallback if unsupported)."""
    idx = lambda b, d, k: (b, k, d)
    if buffers > 2:
        try:
            return pl.BlockSpec((tb, tn, tD), idx, pipeline_mode=pl.Buffered(buffers))
        except (TypeError, AttributeError):
            pass
    return pl.BlockSpec((tb, tn, tD), idx)


# --------------------------------------------------------------------------- #
# Forward wrapper
# --------------------------------------------------------------------------- #
def mean_slide_encoder_forward(features, *, tb=None, tn=None, tD=None,
                               tile_bytes=4 * 1024 * 1024,
                               vmem_limit_bytes=32 * 1024 * 1024):
    """features: [B, N, D] -> mean over dim=1 -> [B, D]."""
    B, N, D = features.shape
    itemsize = jnp.dtype(features.dtype).itemsize
    row_pack = max(8, 32 // itemsize)     # sublane packing: 8 f32, 16 bf16, 32 i8
    multi_core = _tensorcores_per_chip() >= 2

    # ---- batch tile -------------------------------------------------------
    if tb is None:
        tb = 8 if (B >= 8 and B % 8 == 0) else B
        if multi_core and B >= 2 and (B // tb) < 2:
            # v7x: split the batch so both TensorCores get fully contiguous
            # (tn, D) DMA slabs.  Legal for any tb because tb is a leading
            # (non-constrained) dim of both the input and the (B,1,D) output.
            tb = _largest_divisor(B, 1, B // 2) or 1
    if B % tb != 0:
        raise ValueError(f"tb={tb} must divide B={B}")

    # ---- feature (lane) tile ---------------------------------------------
    if tD is None:
        tD = D
        if multi_core and (B // tb) < 2 and D >= 1024 and D % 256 == 0:
            # Only when the batch axis cannot feed both cores (i.e. B == 1).
            tD = D // 2
    if D % tD != 0 or not (tD == D or tD % 128 == 0):
        raise ValueError(f"tD={tD} must divide D={D} and be lane-aligned")

    # ---- sequence tile (capped at ~tile_bytes per buffer) ------------------
    if tn is None:
        row_bytes = tb * tD * itemsize
        max_rows = max(row_pack, tile_bytes // row_bytes)
        tn = _largest_divisor(N, row_pack, min(max_rows, N))
        if tn is None:
            # No aligned divisor: full-extent block if it fits the cap,
            # otherwise a round tile + masked remainder step in the kernel.
            tn = N if N <= max_rows else (max_rows // row_pack) * row_pack
    tn = min(tn, N)
    if not (tn == N or tn % row_pack == 0):
        raise ValueError(f"tn={tn} must equal N={N} or be a multiple of {row_pack}")

    grid_k = pl.cdiv(N, tn)
    rem = N - (grid_k - 1) * tn           # valid rows in the last sequence tile
    buffers = 3 if grid_k >= 3 else 2     # triple-buffer only when it can help

    kernel = functools.partial(_mean_pool_kernel, n_total=N, tn=tn, rem=rem)

    cost = pl.CostEstimate(
        flops=B * N * D,
        transcendentals=0,
        bytes_accessed=B * N * D * itemsize + B * D * itemsize,
    )

    cp_kwargs = dict(dimension_semantics=("parallel", "parallel", "arbitrary"))
    if vmem_limit_bytes is not None:
        cp_kwargs["vmem_limit_bytes"] = int(vmem_limit_bytes)
    # TODO(synk): if an xprof trace on v7x shows one idle TensorCore with plain
    # "parallel" semantics, switch the batch axis to pltpu.CORE_PARALLEL.

    out3 = pl.pallas_call(
        kernel,
        out_shape=jax.ShapeDtypeStruct((B, 1, D), features.dtype),
        grid_spec=pltpu.PrefetchScalarGridSpec(
            num_scalar_prefetch=0,
            grid=(B // tb, D // tD, grid_k),
            in_specs=[_input_spec(tb, tn, tD, buffers)],
            out_specs=pl.BlockSpec((tb, 1, tD), lambda b, d, k: (b, 0, d)),
            scratch_shapes=[pltpu.VMEM((tb, tD), jnp.float32)],
        ),
        compiler_params=pltpu.CompilerParams(**cp_kwargs),
        cost_estimate=cost,
    )(features)

    return out3.reshape(B, D)


# --------------------------------------------------------------------------- #
# Self-test
# --------------------------------------------------------------------------- #
if __name__ == "__main__":
    # Small shapes: batch=2, num_patches=16, embedding_dim=128
    # (real embedding dims are 384..2560; 128 keeps the test small and aligned).
    key = jax.random.PRNGKey(0)
    B, N, D = 2, 16, 128
    features = jax.random.normal(key, (B, N, D), dtype=jnp.float32)
    z_ref = jnp.mean(features, axis=1)            # == torch .mean(dim=1)

    # Auto-tiled path.
    z = jax.block_until_ready(mean_slide_encoder_forward(features))
    assert z.shape == (B, D)
    assert jnp.allclose(z, z_ref, atol=1e-5, rtol=1e-5)

    # Forced small sequence tile: multi-step accumulation across the grid.
    z2 = jax.block_until_ready(mean_slide_encoder_forward(features, tn=8))
    assert jnp.allclose(z2, z_ref, atol=1e-5, rtol=1e-5)

    # Non-divisible N exercises the masked remainder tile (cdiv grid).
    f3 = jax.random.normal(jax.random.PRNGKey(0), (2, 19, 128), dtype=jnp.float32)
    z3_ref = jnp.mean(f3, axis=1)
    z3 = jax.block_until_ready(mean_slide_encoder_forward(f3, tn=8))
    assert jnp.allclose(z3, z3_ref, atol=1e-5, rtol=1e-5)

    print("KERNEL_OK")
</pallas_src>

<mosaic_0001>
module attributes {stable_mosaic.version = 11 : i64} {
  func.func @_mean_pool_kernel(%arg0: i32, %arg1: i32, %arg2: i32, %arg3: memref<2x16x128xf32, #tpu.memory_space<vmem>>, %arg4: memref<2x1x128xf32, #tpu.memory_space<vmem>>, %arg5: memref<2x128xf32, #tpu.memory_space<vmem>>) attributes {dimension_semantics = [#tpu.dimension_semantics<parallel>, #tpu.dimension_semantics<parallel>, #tpu.dimension_semantics<arbitrary>], iteration_bounds = array<i64: 1, 1, 1>, scalar_prefetch = 0 : i64, scratch_operands = 1 : i64, tpu.core_type = #tpu.core_type<tc>, window_params = [{transform_indices = @transform_0, window_bounds = array<i64: 2, 16, 128>}, {transform_indices = @transform_1, window_bounds = array<i64: 2, 1, 128>}]} {
    %c0_i32 = arith.constant 0 : i32
    %0 = arith.cmpi eq, %arg2, %c0_i32 : i32
    %1 = arith.extui %0 : i1 to i32
    %c0_i32_0 = arith.constant 0 : i32
    %2 = arith.cmpi ne, %1, %c0_i32_0 : i32
    scf.if %2 {
      %cst_9 = arith.constant 0.000000e+00 : f32
      %11 = vector.broadcast %cst_9 : f32 to vector<2x128xf32>
      %c0_10 = arith.constant 0 : index
      %c0_11 = arith.constant 0 : index
      %12 = vector.load %arg5[%c0_10, %c0_11] : memref<2x128xf32, #tpu.memory_space<vmem>>, vector<2x128xf32>
      tpu.vector_store %arg5[%c0_10, %c0_11], %11 {strides = array<i32>} : memref<2x128xf32, #tpu.memory_space<vmem>>, vector<2x128xf32>,
    } else {
    }
    %c0 = arith.constant 0 : index
    %c0_1 = arith.constant 0 : index
    %c0_2 = arith.constant 0 : index
    %3 = vector.load %arg3[%c0, %c0_1, %c0_2] : memref<2x16x128xf32, #tpu.memory_space<vmem>>, vector<2x16x128xf32>
    %c0_3 = arith.constant 0 : index
    %c0_4 = arith.constant 0 : index
    %4 = vector.load %arg5[%c0_3, %c0_4] : memref<2x128xf32, #tpu.memory_space<vmem>>, vector<2x128xf32>
    %cst = arith.constant dense<0.000000e+00> : vector<2x128xf32>
    %5 = vector.multi_reduction <add>, %3, %cst [1] : vector<2x16x128xf32> to vector<2x128xf32>
    %6 = arith.addf %4, %5 : vector<2x128xf32>
    %c0_5 = arith.constant 0 : index
    %c0_6 = arith.constant 0 : index
    %7 = vector.load %arg5[%c0_5, %c0_6] : memref<2x128xf32, #tpu.memory_space<vmem>>, vector<2x128xf32>
    tpu.vector_store %arg5[%c0_5, %c0_6], %6 {strides = array<i32>} : memref<2x128xf32, #tpu.memory_space<vmem>>, vector<2x128xf32>,
    %c0_i32_7 = arith.constant 0 : i32
    %8 = arith.cmpi eq, %arg2, %c0_i32_7 : i32
    %9 = arith.extui %8 : i1 to i32
    %c0_i32_8 = arith.constant 0 : i32
    %10 = arith.cmpi ne, %9, %c0_i32_8 : i32
    scf.if %10 {
      %c0_9 = arith.constant 0 : index
      %c0_10 = arith.constant 0 : index
      %11 = vector.load %arg5[%c0_9, %c0_10] : memref<2x128xf32, #tpu.memory_space<vmem>>, vector<2x128xf32>
      %cst_11 = arith.constant 1.600000e+01 : f32
      %12 = vector.broadcast %cst_11 : f32 to vector<2x128xf32>
      %13 = arith.divf %11, %12 : vector<2x128xf32>
      %14 = vector.shape_cast %13 : vector<2x128xf32> to vector<2x1x128xf32>
      %c0_12 = arith.constant 0 : index
      %c0_13 = arith.constant 0 : index
      %c0_14 = arith.constant 0 : index
      %15 = vector.load %arg4[%c0_12, %c0_13, %c0_14] : memref<2x1x128xf32, #tpu.memory_space<vmem>>, vector<2x1x128xf32>
      tpu.vector_store %arg4[%c0_12, %c0_13, %c0_14], %14 {strides = array<i32>} : memref<2x1x128xf32, #tpu.memory_space<vmem>>, vector<2x1x128xf32>,
    } else {
    }
    return
  }
  func.func @transform_0(%arg0: i32, %arg1: i32, %arg2: i32) -> (i32, i32, i32) {
    %c0_i32 = arith.constant 0 : i32
    return %arg0, %arg2, %arg1 : i32, i32, i32
  }
  func.func @transform_1(%arg0: i32, %arg1: i32, %arg2: i32) -> (i32, i32, i32) {
    %c0_i32 = arith.constant 0 : i32
    %c0_i32_0 = arith.constant 0 : i32
    return %arg0, %c0_i32, %arg1 : i32, i32, i32
  }
}

</mosaic_0001>

<bundles_post_ra>
// kernel: tpu_custom_call.1
= control target key start
LH: loop header
LB: loop body
LE: loop exit
PB: predicated region body
PF: predicated region fallthrough
CT: control target
= control target key end

     0   :  { %6 = vsyncpa [#allocation4], 0  ;;  %s204_s0 = inlined_call_operand.hbm [shape: f32[2,16,128], index: 0, kind: input, shape index: {}]   ;;  %s205_s1 = inlined_call_operand.hbm [shape: f32[2,1,128], index: 1, kind: output, shape index: {}]  }
   0x1   :  { %7 = vsyncpa [#allocation5], 0  ;;  %s162_s6 = smov [#allocation3]   ;;  %s114_s10 = scalar_lea.hbm %s204_s0, 512 }
   0x2   :  { %s13_s7 = sshll.u32 %s162_s6, 4  ;;  %p115_p0 = scmp.ne.s32.totalorder %s204_s0, %s114_s10  ;;  %s14_s7 = int_to_ptr.vmem [resolvable:$true] %s13_s7 }
   0x3   :  { %p118_p1 = scmp.lt.u32.totalorder %s114_s10, %s204_s0 }
   0x5   :  { %p120_p2 = pnand %p118_p1, %p115_p0 }
   0x7   :  { %123 = shalt.err (!%p120_p2)
}
   0x8   :  { %s124_s15 = scalar_lea.vmem %s14_s7, 512  ;;  %p129_p4 = scmp.lt.s32.totalorder %s14_s7, %s14_s7 }
   0x9   :  { %p125_p3 = scmp.ne.s32.totalorder %s14_s7, %s124_s15  ;;  %p130_p5 = scmp.lt.s32.totalorder %s124_s15, %s124_s15 }
   0xb   :  { %p131_p6 = por %p130_p5, %p129_p4 }
   0xd   :  { %p132_p7 = pnand %p131_p6, %p125_p3 }
   0xf   :  { %135 = shalt.err (!%p132_p7)
}
  0x10   :  { %s163_s16 = smov 128   ;;  %s164_s17 = smov 8  }
  0x11   :  { %19 = dma.hbm_to_vmem [thread:$0]  %s204_s0, 512, %s14_s7, [#allocation4], %s163_s16, %s163_s16, %s164_s17  }
  0x12   :  { %158 = dma.done.wait [#allocation4], 512  }
  0x13   :  { %159 = vsyncadd [#allocation4], 4294966784  ;;  %v165_v0 = vmov 0.0   ;;  %v28_v1 = vld [vmem:[#allocation3] sm:$0xff]  ;;  %v29_v2 = vld [vmem:[#allocation3 + $0x8] sm:$0xff]  ;;  %vm49_vm0 = vcmask 1041409   ;;  %v64_v24 = vlaneseq }
  0x14   :  { %27 = vst [vmem:[#allocation2] sm:$0x3] %v165_v0  ;;  %v30_v3 = vld [vmem:[#allocation3 + $0x10] sm:$0xff]  ;;  %v31_v4 = vld [vmem:[#allocation3 + $0x18] sm:$0xff]  ;;  %v33_v5 = vadd.f32 %v29_v2, %v28_v1  ;;  %v166_v22 = vmov 1966171168  }
  0x15   :  { %v40_v6 = vadd.f32 %v31_v4, %v30_v3  ;;  %v62_v23 = vunpack.c.l.s4 %v166_v22  ;;  %v65_v26 = vshrl.u32 %v64_v24, 7  ;;  %s167_s0 = smov [#allocation6]  }
  0x16   :  { %v34_v7 = vrot.slane %v33_v5, 4  ;;  %s92_s20 = sshll.u32 %s167_s0, 4  ;;  %s93_s20 = int_to_ptr.vmem [resolvable:$true] %s92_s20 }
  0x17   :  { %v41_v8 = vrot.slane %v40_v6, 4  ;;  %v63_v25 = vunpack.c.0.s8 %v62_v23  ;;  %s136_s21 = scalar_lea.vmem %s93_s20, 32  ;;  %p141_p9 = scmp.lt.s32.totalorder %s93_s20, %s93_s20 }
  0x18   :  { %v35_v9 = vadd.f32 %v34_v7, %v33_v5  ;;  %p137_p8 = scmp.ne.s32.totalorder %s93_s20, %s136_s21  ;;  %p142_p10 = scmp.lt.s32.totalorder %s136_s21, %s136_s21 }
  0x19   :  { %v42_v10 = vadd.f32 %v41_v8, %v40_v6  ;;  %v66_v27 = vsub.s32 %v63_v25, %v65_v26 }
  0x1a   :  { %v36_v11 = vrot.slane %v35_v9, 2  ;;  %p143_p11 = por %p142_p10, %p141_p9 }
  0x1b   :  { %v43_v12 = vrot.slane %v42_v10, 2  ;;  %v32_v18 = vld [vmem:[#allocation2] sm:$0x3] }
  0x1c   :  { %v37_v13 = vadd.f32 %v36_v11, %v35_v9  ;;  %p144_p12 = pnand %p143_p11, %p137_p8 }
  0x1d   :  { %v44_v14 = vadd.f32 %v43_v12, %v42_v10 }
  0x1e   :  { %v38_v15 = vrot.slane %v37_v13, 1 }
  0x1f   :  { %v45_v16 = vrot.slane %v44_v14, 1 }
  0x20   :  { %v39_v17 = vadd.f32 %v38_v15, %v37_v13 }
  0x21   :  { %v46_v19 = vadd.f32 %v45_v16, %v44_v14 }
  0x23   :  { %v50_v20 = vsel %vm49_vm0, %v46_v19, %v39_v17 }
  0x24   :  { %v52_v21 = vadd.f32 %v50_v20, %v32_v18 }
  0x26   :  { %53 = vst [vmem:[#allocation2] sm:$0x3] %v52_v21 }
  0x2d   :  { %v57_v28 = vld [vmem:[#allocation2] sm:$0x3] }
  0x2e   :  { %v59_v29 = vmul.f32 0.0625, %v57_v28 }
  0x30   :  { %v67_v30 = vrot.slane %v59_v29, %v66_v27 }
  0x32   :  { %104 = vst.sshfl [vmem:[#allocation6] sm:$0x1 pattern:$0x73625140] %v67_v30  ;;  %v68_v31 = vcombine.high %v67_v30, %v67_v30 }
  0x34   :  { %105 = vst.sshfl [vmem:[#allocation6 + $0x1] sm:$0x1 pattern:$0x73625140] %v68_v31 }
  0x35   :  { %147 = shalt.err (!%p144_p12)
}
  0x36   :  { %s148_s24 = scalar_lea.hbm %s205_s1, 32 }
  0x37   :  { %p149_p13 = scmp.ne.s32.totalorder %s205_s1, %s148_s24  ;;  %p152_p0 = scmp.lt.u32.totalorder %s148_s24, %s205_s1 }
  0x39   :  { %p154_p1 = pnand %p152_p0, %p149_p13 }
  0x3b   :  { %157 = shalt.err (!%p154_p1)
}
  0x3c   :  { %s168_s29 = smov 16   ;;  %s169_s30 = smov 1  }
  0x3d   :  { %98 = dma.vmem_to_hbm [thread:$0]  %s93_s20, 32, %s205_s1, [#allocation5], %s168_s29, %s168_s29, %s169_s30  }
  0x3e   :  { %160 = dma.done.wait [#allocation5], 32  }
  0x3f   :  { %161 = vsyncadd [#allocation5], 4294967264 }
  0x40   :  { %102 = vsyncpa [#allocation4], 1 }
  0x41   :  { %103 = vsyncpa [#allocation5], 1 }

</bundles_post_ra>
